<compile_context>
chip_gen: v7x
topology: tpu7x:2x2x1
jax: 0.10.0
libtpu: 0.0.40
codegen_flags: <defaults>
</compile_context>

<pallas_src>
import jax
import jax.numpy as jnp
from jax.experimental import pallas as pl
from jax.experimental.pallas import tpu as pltpu


def feature_extractor_kernel(sentence_ref, pooled_ref, mask_ref, wt_ref, b_ref,
                             out_ref):
    sentence = sentence_ref[...]                 # (TB, W, E)  compute dtype (cast in wrapper)
    pooled = pooled_ref[...]                     # (TB, E)     compute dtype
    mask = mask_ref[...]                         # (TB, W)     f32, nonzero == keep
    wt = wt_ref[...]                             # (E, E)      weight.T, compute dtype (resident)
    b = b_ref[...]                               # (1, E)      f32 (resident)

    # Linear: span_pooled @ W.T + bias — single MXU matmul with a real M dimension,
    # f32 accumulation.
    queries = jnp.dot(pooled, wt, preferred_element_type=jnp.float32) + b     # (TB, E) f32

    # attn = einsum('be,bwe->bw') as VPU multiply + lane (last-axis) reduce; avoids the
    # M=1 batched-matmul / per-batch XLU-transpose lowering.  f32 accumulation.
    q = queries.astype(sentence.dtype)
    attn = jnp.sum((q[:, None, :] * sentence).astype(jnp.float32), axis=-1)   # (TB, W)

    # Masked softmax over W (exact f32, matching torch.where + F.softmax).
    neg_inf = jnp.float32(-10000.0)
    masked = jnp.where(mask != 0, attn, neg_inf)                              # (TB, W)
    m = jnp.max(masked, axis=-1, keepdims=True)
    e = jnp.exp(masked - m)
    denom = jnp.sum(e, axis=-1, keepdims=True)
    probs = e * pl.reciprocal(denom, approx=False)                            # (TB, W)

    # context = einsum('bwe,bw->be') as VPU multiply + sublane reduce (again no M=1 MXU
    # padding); f32 accumulation.
    p = probs.astype(sentence.dtype)
    ctx = jnp.sum((sentence * p[:, :, None]).astype(jnp.float32), axis=1)     # (TB, E)

    out_ref[...] = ctx.astype(out_ref.dtype)


def _pick_batch_tile(B, W, E, itemsize, target_bytes):
    """Largest batch tile whose double-buffered sentence block + f32 temps fit budget."""
    per_row = W * E * (2 * itemsize + 8) + 16 * (W + E)   # dbl-buffered input + f32 temps
    tb_max = max(1, target_bytes // per_row)
    if B <= tb_max:
        return B, 0                               # whole batch resident; no padding
    # Sublane-aligned tile (multiple of 8) so (tb, E)/(tb, W) blocks keep native layout.
    tb = max(8, (min(tb_max, B) // 8) * 8)
    pad = (-B) % tb
    # TODO(synk): when pad > 0, a second small pallas_call on the ragged tail would
    # avoid the extra HBM pass that jnp.pad of (B, W, E) costs.
    return tb, pad


def feature_extractor(sentence, span_pooled, span_mask, weight, bias, *,
                      compute_dtype=jnp.float32,
                      vmem_target_bytes=20 << 20):
    """sentence: (B, W, E); span_pooled: (B, E); span_mask: (B, W) nonzero==keep;
    weight: (E, E) torch nn.Linear layout (out, in); bias: (E,)."""
    B, W, E = sentence.shape
    itemsize = jnp.dtype(compute_dtype).itemsize

    tb, pad = _pick_batch_tile(B, W, E, itemsize, vmem_target_bytes)

    # Cast the bandwidth-dominant operands in the wrapper so the kernel DMAs the
    # compute dtype (halves HBM traffic for bf16) and never re-casts a full tile.
    sentence_c = sentence.astype(compute_dtype)
    pooled_c = span_pooled.astype(compute_dtype)
    mask_f = (span_mask != 0).astype(jnp.float32)
    wt = weight.T.astype(compute_dtype)                       # pre-transposed, resident
    b2 = bias.reshape(1, E).astype(jnp.float32)

    if pad:
        sentence_c = jnp.pad(sentence_c, ((0, pad), (0, 0), (0, 0)))
        pooled_c = jnp.pad(pooled_c, ((0, pad), (0, 0)))
        mask_f = jnp.pad(mask_f, ((0, pad), (0, 0)))
    Bp = B + pad

    # Explicit scoped-VMEM limit: double-buffered inputs + resident weight + f32 temps,
    # clamped to [32 MiB (v5e default is only 16), 48 MiB (under v7x's 64 MiB physical)].
    sent_block = tb * W * E * itemsize
    small_blocks = 2 * tb * (E * itemsize + 4 * W + 4 * E)
    resident = E * E * itemsize + 4 * E
    temps = 2 * tb * W * E * 4 + 16 * tb * (W + E)
    need = 2 * sent_block + small_blocks + resident + temps
    vmem_limit = int(min(max(int(need * 1.5), 32 << 20), 48 << 20))

    out = pl.pallas_call(
        feature_extractor_kernel,
        out_shape=jax.ShapeDtypeStruct((Bp, E), jnp.float32),
        grid_spec=pltpu.PrefetchScalarGridSpec(
            num_scalar_prefetch=0,
            grid=(Bp // tb,),
            in_specs=[
                pl.BlockSpec((tb, W, E), lambda i: (i, 0, 0)),   # sentence (streamed)
                pl.BlockSpec((tb, E), lambda i: (i, 0)),         # span_pooled
                pl.BlockSpec((tb, W), lambda i: (i, 0)),         # span_mask
                pl.BlockSpec((E, E), lambda i: (0, 0)),          # weight.T (resident)
                pl.BlockSpec((1, E), lambda i: (0, 0)),          # bias (resident)
            ],
            out_specs=pl.BlockSpec((tb, E), lambda i: (i, 0)),
        ),
        compiler_params=pltpu.CompilerParams(
            dimension_semantics=("parallel",),
            vmem_limit_bytes=vmem_limit),
    )(sentence_c, pooled_c, mask_f, wt, b2)
    return out[:B]


def feature_extractor_ref(sentence, span_pooled, span_mask, weight, bias):
    """Pure-JAX reference matching the PyTorch module."""
    queries = span_pooled @ weight.T + bias
    attn = jnp.einsum('be,bwe->bw', queries, sentence)
    masked = jnp.where(span_mask != 0, attn, jnp.float32(-10000.0))
    probs = jax.nn.softmax(masked, axis=1)
    return jnp.einsum('bwe,bw->be', sentence, probs)


if __name__ == "__main__":
    B, W, E = 2, 16, 32
    key = jax.random.PRNGKey(0)
    k_sent, k_pool, k_mask, k_w = jax.random.split(key, 4)

    sentence = jax.random.normal(k_sent, (B, W, E), dtype=jnp.float32)
    span_pooled = jax.random.normal(k_pool, (B, E), dtype=jnp.float32)
    span_mask = (jax.random.uniform(k_mask, (B, W)) > 0.3).astype(jnp.float32)
    span_mask = span_mask.at[:, 0].set(1.0)          # >=1 unmasked token per row

    # Deterministic params mirroring the torch init (std=0.02 weight, zero bias).
    weight = 0.02 * jax.random.normal(k_w, (E, E), dtype=jnp.float32)
    bias = jnp.zeros((E,), dtype=jnp.float32)

    ref = feature_extractor_ref(sentence, span_pooled, span_mask, weight, bias)

    # Exact-f32 path (matches torch semantics to tight tolerance).
    out = feature_extractor(sentence, span_pooled, span_mask, weight, bias)
    out = jax.block_until_ready(out)
    assert out.shape == (B, E)
    assert jnp.allclose(out, ref, atol=1e-5, rtol=1e-5)

    # bf16-in-HBM path (recommended on v6e/v7x): operands DMA'd as bf16, f32
    # accumulation everywhere, exact-f32 softmax — expect ~1e-2 drift vs torch.
    out_bf16 = feature_extractor(sentence, span_pooled, span_mask, weight, bias,
                                 compute_dtype=jnp.bfloat16)
    out_bf16 = jax.block_until_ready(out_bf16)
    assert jnp.allclose(out_bf16, ref, atol=1e-1, rtol=1e-1)

    print("KERNEL_OK")
</pallas_src>

<mosaic_0001>
module attributes {stable_mosaic.version = 11 : i64} {
  func.func @feature_extractor_kernel(%arg0: i32, %arg1: memref<2x16x32xf32, #tpu.memory_space<vmem>>, %arg2: memref<2x32xf32, #tpu.memory_space<vmem>>, %arg3: memref<2x16xf32, #tpu.memory_space<vmem>>, %arg4: memref<32x32xf32, #tpu.memory_space<vmem>>, %arg5: memref<1x32xf32, #tpu.memory_space<vmem>>, %arg6: memref<2x32xf32, #tpu.memory_space<vmem>>) attributes {dimension_semantics = [#tpu.dimension_semantics<parallel>], iteration_bounds = array<i64: 1>, scalar_prefetch = 0 : i64, scratch_operands = 0 : i64, tpu.core_type = #tpu.core_type<tc>, window_params = [{transform_indices = @transform_0, window_bounds = array<i64: 2, 16, 32>}, {transform_indices = @transform_1, window_bounds = array<i64: 2, 32>}, {transform_indices = @transform_2, window_bounds = array<i64: 2, 16>}, {pipeline_mode = #tpu.pipeline_mode<synchronous>, transform_indices = @transform_3, window_bounds = array<i64: 32, 32>}, {pipeline_mode = #tpu.pipeline_mode<synchronous>, transform_indices = @transform_4, window_bounds = array<i64: 1, 32>}, {transform_indices = @transform_5, window_bounds = array<i64: 2, 32>}]} {
    %c0 = arith.constant 0 : index
    %c0_0 = arith.constant 0 : index
    %c0_1 = arith.constant 0 : index
    %0 = vector.load %arg1[%c0, %c0_0, %c0_1] : memref<2x16x32xf32, #tpu.memory_space<vmem>>, vector<2x16x32xf32>
    %c0_2 = arith.constant 0 : index
    %c0_3 = arith.constant 0 : index
    %1 = vector.load %arg2[%c0_2, %c0_3] : memref<2x32xf32, #tpu.memory_space<vmem>>, vector<2x32xf32>
    %c0_4 = arith.constant 0 : index
    %c0_5 = arith.constant 0 : index
    %2 = vector.load %arg3[%c0_4, %c0_5] : memref<2x16xf32, #tpu.memory_space<vmem>>, vector<2x16xf32>
    %c0_6 = arith.constant 0 : index
    %c0_7 = arith.constant 0 : index
    %3 = vector.load %arg4[%c0_6, %c0_7] : memref<32x32xf32, #tpu.memory_space<vmem>>, vector<32x32xf32>
    %c0_8 = arith.constant 0 : index
    %c0_9 = arith.constant 0 : index
    %4 = vector.load %arg5[%c0_8, %c0_9] : memref<1x32xf32, #tpu.memory_space<vmem>>, vector<1x32xf32>
    %cst = arith.constant dense<0.000000e+00> : vector<2x32xf32>
    %5 = tpu.matmul %1, %3, %cst {dimension_numbers = #tpu.dot_dimension_numbers<[1], [0], [0], [1], [0, 0, 1, 1], [], []>} : vector<2x32xf32>, vector<32x32xf32>, vector<2x32xf32> -> vector<2x32xf32>
    %6 = vector.broadcast %4 : vector<1x32xf32> to vector<2x32xf32>
    %7 = arith.addf %5, %6 : vector<2x32xf32>
    %8 = vector.shape_cast %7 : vector<2x32xf32> to vector<2x1x32xf32>
    %9 = vector.broadcast %8 : vector<2x1x32xf32> to vector<2x16x32xf32>
    %10 = arith.mulf %9, %0 : vector<2x16x32xf32>
    %cst_10 = arith.constant dense<0.000000e+00> : vector<2x16xf32>
    %11 = vector.multi_reduction <add>, %10, %cst_10 [2] : vector<2x16x32xf32> to vector<2x16xf32>
    %cst_11 = arith.constant 0.000000e+00 : f32
    %12 = vector.broadcast %cst_11 : f32 to vector<2x16xf32>
    %13 = arith.cmpf one, %2, %12 : vector<2x16xf32>
    %cst_12 = arith.constant -1.000000e+04 : f32
    %14 = vector.broadcast %cst_12 : f32 to vector<2x16xf32>
    %15 = arith.select %13, %11, %14 : vector<2x16xi1>, vector<2x16xf32>
    %cst_13 = arith.constant dense<0xFF800000> : vector<2xf32>
    %16 = vector.multi_reduction <maximumf>, %15, %cst_13 [1] : vector<2x16xf32> to vector<2xf32>
    %17 = vector.shape_cast %16 : vector<2xf32> to vector<2x1xf32>
    %18 = vector.broadcast %17 : vector<2x1xf32> to vector<2x16xf32>
    %19 = arith.subf %15, %18 : vector<2x16xf32>
    %20 = math.exp %19 : vector<2x16xf32>
    %cst_14 = arith.constant dense<0.000000e+00> : vector<2xf32>
    %21 = vector.multi_reduction <add>, %20, %cst_14 [1] : vector<2x16xf32> to vector<2xf32>
    %22 = vector.shape_cast %21 : vector<2xf32> to vector<2x1xf32>
    %23 = tpu.reciprocal %22 : vector<2x1xf32> -> vector<2x1xf32>
    %24 = vector.broadcast %23 : vector<2x1xf32> to vector<2x16xf32>
    %25 = arith.mulf %20, %24 : vector<2x16xf32>
    %26 = vector.shape_cast %25 : vector<2x16xf32> to vector<2x16x1xf32>
    %27 = vector.broadcast %26 : vector<2x16x1xf32> to vector<2x16x32xf32>
    %28 = arith.mulf %0, %27 : vector<2x16x32xf32>
    %cst_15 = arith.constant dense<0.000000e+00> : vector<2x32xf32>
    %29 = vector.multi_reduction <add>, %28, %cst_15 [1] : vector<2x16x32xf32> to vector<2x32xf32>
    %c0_16 = arith.constant 0 : index
    %c0_17 = arith.constant 0 : index
    %30 = vector.load %arg6[%c0_16, %c0_17] : memref<2x32xf32, #tpu.memory_space<vmem>>, vector<2x32xf32>
    tpu.vector_store %arg6[%c0_16, %c0_17], %29 {strides = array<i32>} : memref<2x32xf32, #tpu.memory_space<vmem>>, vector<2x32xf32>,
    return
  }
  func.func @transform_0(%arg0: i32) -> (i32, i32, i32) {
    %c0_i32 = arith.constant 0 : i32
    %c0_i32_0 = arith.constant 0 : i32
    %c0_i32_1 = arith.constant 0 : i32
    return %arg0, %c0_i32, %c0_i32_0 : i32, i32, i32
  }
  func.func @transform_1(%arg0: i32) -> (i32, i32) {
    %c0_i32 = arith.constant 0 : i32
    %c0_i32_0 = arith.constant 0 : i32
    return %arg0, %c0_i32 : i32, i32
  }
  func.func @transform_2(%arg0: i32) -> (i32, i32) {
    %c0_i32 = arith.constant 0 : i32
    %c0_i32_0 = arith.constant 0 : i32
    return %arg0, %c0_i32 : i32, i32
  }
  func.func @transform_3(%arg0: i32) -> (i32, i32) {
    %c0_i32 = arith.constant 0 : i32
    %c0_i32_0 = arith.constant 0 : i32
    %c0_i32_1 = arith.constant 0 : i32
    return %c0_i32, %c0_i32_0 : i32, i32
  }
  func.func @transform_4(%arg0: i32) -> (i32, i32) {
    %c0_i32 = arith.constant 0 : i32
    %c0_i32_0 = arith.constant 0 : i32
    %c0_i32_1 = arith.constant 0 : i32
    return %c0_i32, %c0_i32_0 : i32, i32
  }
  func.func @transform_5(%arg0: i32) -> (i32, i32) {
    %c0_i32 = arith.constant 0 : i32
    %c0_i32_0 = arith.constant 0 : i32
    return %arg0, %c0_i32 : i32, i32
  }
}

</mosaic_0001>

<bundles_post_ra>
// kernel: tpu_custom_call.1
= control target key start
LH: loop header
LB: loop body
LE: loop exit
PB: predicated region body
PF: predicated region fallthrough
CT: control target
= control target key end

     0   :  { %10 = vsyncpa [#allocation3], 0  ;;  %s521_s0 = inlined_call_operand.hbm [shape: f32[2,16,32], index: 0, kind: input, shape index: {}]   ;;  %s522_s1 = inlined_call_operand.vmem [shape: f32[2,32], index: 1, kind: input, shape index: {}]   ;;  %s523_s2 = inlined_call_operand.vmem [shape: f32[2,16], index: 2, kind: input, shape index: {}]   ;;  %s524_s3 = inlined_call_operand.hbm [shape: f32[32,32], index: 3, kind: input, shape index: {}]   ;;  %s525_s4 = inlined_call_operand.vmem [shape: f32[1,32], index: 4, kind: input, shape index: {}]   ;;  %s526_s5 = inlined_call_operand.hbm [shape: f32[2,32], index: 5, kind: output, shape index: {}]  }
   0x1   :  { %11 = vsyncpa [#allocation6], 0 }
   0x2   :  { %12 = vsyncpa [#allocation4], 0  ;;  %s407_s18 = smov [#allocation2]   ;;  %s335_s22 = scalar_lea.hbm %s521_s0, 512 }
   0x3   :  { %s18_s19 = sshll.u32 %s407_s18, 4  ;;  %p336_p0 = scmp.ne.s32.totalorder %s521_s0, %s335_s22  ;;  %s19_s19 = int_to_ptr.vmem [resolvable:$true] %s18_s19 }
   0x4   :  { %p339_p1 = scmp.lt.u32.totalorder %s335_s22, %s521_s0 }
   0x6   :  { %p341_p2 = pnand %p339_p1, %p336_p0 }
   0x8   :  { %344 = shalt.err (!%p341_p2)
}
   0x9   :  { %s345_s27 = scalar_lea.vmem %s19_s19, 512  ;;  %p350_p4 = scmp.lt.s32.totalorder %s19_s19, %s19_s19 }
   0xa   :  { %p346_p3 = scmp.ne.s32.totalorder %s19_s19, %s345_s27  ;;  %p351_p5 = scmp.lt.s32.totalorder %s345_s27, %s345_s27 }
   0xc   :  { %p352_p6 = por %p351_p5, %p350_p4 }
   0xe   :  { %p353_p7 = pnand %p352_p6, %p346_p3 }
  0x10   :  { %356 = shalt.err (!%p353_p7)
}
  0x11   :  { %s408_s28 = smov 128   ;;  %s409_s29 = smov 8  }
  0x12   :  { %24 = dma.hbm_to_vmem [thread:$0]  %s521_s0, 512, %s19_s19, [#allocation3], %s408_s28, %s408_s28, %s409_s29  }
  0x13   :  { %s410_s7 = smov [#allocation5]   ;;  %s357_s11 = scalar_lea.hbm %s524_s3, 512 }
  0x14   :  { %s34_s8 = sshll.u32 %s410_s7, 4  ;;  %p358_p8 = scmp.ne.s32.totalorder %s524_s3, %s357_s11  ;;  %s35_s8 = int_to_ptr.vmem [resolvable:$true] %s34_s8 }
  0x15   :  { %p361_p9 = scmp.lt.u32.totalorder %s357_s11, %s524_s3 }
  0x17   :  { %p363_p10 = pnand %p361_p9, %p358_p8 }
  0x19   :  { %366 = shalt.err (!%p363_p10)
}
  0x1a   :  { %s367_s16 = scalar_lea.vmem %s35_s8, 512  ;;  %p372_p12 = scmp.lt.s32.totalorder %s35_s8, %s35_s8 }
  0x1b   :  { %p368_p11 = scmp.ne.s32.totalorder %s35_s8, %s367_s16  ;;  %p373_p13 = scmp.lt.s32.totalorder %s367_s16, %s367_s16 }
  0x1d   :  { %p374_p0 = por %p373_p13, %p372_p12 }
  0x1f   :  { %p375_p1 = pnand %p374_p0, %p368_p11 }
  0x21   :  { %378 = shalt.err (!%p375_p1)
}
  0x22   :  { %40 = dma.hbm_to_vmem [thread:$0]  %s524_s3, 512, %s35_s8, [#allocation6], %s408_s28, %s408_s28, %s409_s29  }
  0x23   :  { %401 = dma.done.wait [#allocation3], 512  }
  0x24   :  { %402 = vsyncadd [#allocation3], 4294966784 }
  0x25   :  { %403 = dma.done.wait [#allocation6], 512  }
  0x26   :  { %404 = vsyncadd [#allocation6], 4294966784  ;;  %v411_v0 = vmov 0.0|0.0   ;;  %vm412_vm0 = vmmov 0   ;;  %v413_v1 = vmov 0.0   ;;  %v55_v2 = vld [vmem:[#allocation5] sm:$0xff]  ;;  %v144_v11 = vlaneseq }
  0x27   :  { %316 = vmatprep.subr.bf16.mxu0 %v411_v0  ;;  %313 = vmatprep.mubr.msk.f32.mxu0 %vm412_vm0, %v413_v1  ;;  %v56_v3 = vld [vmem:[#allocation5 + $0x8] sm:$0xff]  ;;  %v57_v4 = vld [vmem:[#allocation5 + $0x10] sm:$0xff]  ;;  %v58_v6 = vld [vmem:[#allocation5 + $0x18] sm:$0xff]  ;;  %vm66_vm1 = vcmask 261120   ;;  %v414_v9 = vmov 1966171168  }
  0x28   :  { %v317_v5 = vpack.c.bf16 %v56_v3, %v55_v2  ;;  %v320_v7 = vpack.c.bf16 %v58_v6, %v57_v4  ;;  %v53_v8 = vld [vmem:[%s522_s1] sm:$0x3]  ;;  %v142_v10 = vunpack.c.l.s4 %v414_v9  ;;  %v474_v13 = vshrl.u32 %v144_v11, 7  ;;  %v483_v26 = vld [vmem:[#allocation2 + $0x10] sm:$0xff]  ;;  %v50_v27 = vld [vmem:[#allocation2 + $0x8] sm:$0xff] }
  0x29   :  { %v298_v14 = vld [vmem:[%s525_s4] ss:$0 sm:$0xff]  ;;  %v486_v30 = vld [vmem:[#allocation2 + $0x18] sm:$0xff]  ;;  %v195_v38 = vand.u32 127, %v144_v11  ;;  %vm205_vm2 = vcmask 130112   ;;  %vm216_vm3 = vcmask 1041409  }
  0x2a   :  { %318 = vmatpush3.bf16.msra.mxu0 %v317_v5  ;;  %v143_v12 = vunpack.c.0.s8 %v142_v10  ;;  %v165_v20 = vsub.s32 0, %v474_v13  ;;  %v481_v23 = vld [vmem:[#allocation2] sm:$0xff]  ;;  %vm220_vm5 = vcmask 123904   ;;  %v245_v1 = vsub.s32 1, %v474_v13 }
  0x2b   :  { %319 = vmatprep.subr.bf16.mxu0 %v411_v0  ;;  %v200_v39 = vadd.s32 4294967288, %v195_v38  ;;  %v198_v43 = vsub.s32 %v195_v38, %v474_v13  ;;  %v54_v46 = vld [vmem:[%s523_s2] sm:$0x3]  ;;  %s415_s2 = smov [#allocation7]   ;;  %vm280_vm6 = vcmask 254976  }
  0x2c   :  { %v146_v15 = vsub.s32 %v143_v12, %v474_v13  ;;  %vm189_vm4 = vcmp.ne.f32.partialorder %v54_v46, 0.0  ;;  %s288_s21 = sshll.u32 %s415_s2, 4  ;;  %s289_s21 = int_to_ptr.vmem [resolvable:$true] %s288_s21 }
  0x2d   :  { %v203_v41 = vsub.s32 %v200_v39, %v474_v13  ;;  %s379_s22 = scalar_lea.vmem %s289_s21, 32  ;;  %p384_p3 = scmp.lt.s32.totalorder %s289_s21, %s289_s21 }
  0x2e   :  { %321 = vmatpush3.bf16.msra.mxu0 %v320_v7  ;;  %p380_p2 = scmp.ne.s32.totalorder %s289_s21, %s379_s22  ;;  %p385_p4 = scmp.lt.s32.totalorder %s379_s22, %s379_s22 }
  0x30   :  { %p386_p5 = por %p385_p4, %p384_p3 }
  0x31   :  { %314 = vmatmul.mubr.msk.f32.vlgmr.msra.gmra.mrb[0].mxu0 %vm66_vm1, %v53_v8 }
  0x32   :  { %p387_p6 = pnand %p386_p5, %p380_p2 }
 0x104   :  { %v136_v16 = vpop.f32.mrb[0].mxu0 }
 0x105   :  { %v137_v17 = vadd.f32 %v298_v14, %v136_v16  ;;  %v315_v18 = vpop.f32.mrb[1].mxu0 }
 0x107   :  { %v147_v19 = vrot.slane %v137_v17, %v146_v15 }
 0x109   :  { %v148_v21 = vcombine.high %v147_v19, %v147_v19  ;;  %v155_v22 = vrot.slane %v147_v19, %v146_v15 }
 0x10b   :  { %v166_v24 = vrot.slane %v155_v22, %v165_v20  ;;  %v162_v25 = vrot.slane %v148_v21, %v146_v15 }
 0x10d   :  { %v173_v28 = vmul.f32 %v166_v24, %v481_v23  ;;  %v170_v29 = vrot.slane %v162_v25, %v165_v20  ;;  %v174_v33 = vmul.f32 %v166_v24, %v50_v27 }
 0x10f   :  { %v177_v31 = vsel %vm66_vm1, %v173_v28, 0.0  ;;  %v175_v32 = vmul.f32 %v170_v29, %v483_v26  ;;  %v176_v35 = vmul.f32 %v170_v29, %v486_v30  ;;  %v180_v36 = vsel %vm66_vm1, %v174_v33, 0.0 }
 0x110   :  { %178 = vadd.xlane.f32.xlu0 %v177_v31 }
 0x111   :  { %v183_v34 = vsel %vm66_vm1, %v175_v32, 0.0  ;;  %v186_v37 = vsel %vm66_vm1, %v176_v35, 0.0 }
 0x112   :  { %184 = vadd.xlane.f32.xlu1 %v183_v34 }
 0x114   :  { %181 = vadd.xlane.f32.xlu0 %v180_v36 }
 0x116   :  { %187 = vadd.xlane.f32.xlu1 %v186_v37 }
 0x19d   :  { %v179_v40 = vpop.xlane.xlu0 %178 }
 0x19e   :  { %v199_v48 = vrot.slane %v179_v40, %v198_v43 }
 0x19f   :  { %v185_v42 = vpop.xlane.xlu1 %184 }
 0x1a0   :  { %v210_v49 = vrot.slane %v185_v42, %v198_v43 }
 0x1a1   :  { %v182_v44 = vpop.xlane.xlu0 %181 }
 0x1a2   :  { %v204_v45 = vrot.slane %v182_v44, %v203_v41 }
 0x1a3   :  { %v188_v47 = vpop.xlane.xlu1 %187 }
 0x1a4   :  { %v214_v50 = vrot.slane %v188_v47, %v203_v41  ;;  %v206_v51 = vsel %vm205_vm2, %v204_v45, %v199_v48 }
 0x1a6   :  { %v215_v52 = vsel %vm205_vm2, %v214_v50, %v210_v49 }
 0x1a7   :  { %v217_v53 = vsel %vm216_vm3, %v215_v52, %v206_v51 }
 0x1a8   :  { %v219_v54 = vsel %vm189_vm4, %v217_v53, -10000.0 }
 0x1a9   :  { %v221_v55 = vsel %vm220_vm5, %v219_v54, -inf }
 0x1aa   :  { %222 = vmax.xlane.f32.xlu0 %v221_v55 }
 0x237   :  { %v223_v56 = vpop.xlane.xlu0 %222 }
 0x238   :  { %v224_v57 = vsub.f32 %v219_v54, %v223_v56 }
 0x23a   :  { %v225_v58 = vmul.f32 1.442695, %v224_v57 }
 0x23c   :  { %331 = vpow2.f32 %v225_v58 }
 0x246   :  { %v332_v59 = vpop.eup %331 }
 0x247   :  { %v227_v60 = vsel %vm220_vm5, %v332_v59, 0.0 }
 0x248   :  { %228 = vadd.xlane.f32.xlu1 %v227_v60 }
 0x2d5   :  { %v229_v61 = vpop.xlane.xlu1 %228 }
 0x2d6   :  { %333 = vrcp.f32 %v229_v61 }
 0x2e0   :  { %v334_v62 = vpop.eup %333 }
 0x2e1   :  { %v231_v63 = vmul.f32 %v334_v62, %v332_v59 }
 0x2e3   :  { %v235_v0 = vrot.slane %v231_v63, %v165_v20  ;;  %v246_v2 = vrot.slane %v231_v63, %v245_v1 }
 0x2e5   :  { %241 = vbcast.lane.b32.xlu1 %v235_v0, 264  ;;  %237 = vbcast.lane.b32.xlu0 %v235_v0, 256 }
 0x2e9   :  { %248 = vbcast.lane.b32.xlu1 %v246_v2, 256 }
 0x2ed   :  { %252 = vbcast.lane.b32.xlu1 %v246_v2, 264 }
 0x357   :  { %v242_v3 = vpop.permute.xlu1 %241  ;;  %v238_v4 = vpop.permute.xlu0 %237 }
 0x358   :  { %v255_v5 = vmul.f32 %v242_v3, %v50_v27  ;;  %v254_v6 = vmul.f32 %v238_v4, %v481_v23 }
 0x35a   :  { %v259_v7 = vsel %vm66_vm1, %v255_v5, 0.0  ;;  %v258_v8 = vsel %vm66_vm1, %v254_v6, 0.0 }
 0x35b   :  { %v260_v9 = vadd.f32 %v259_v7, %v258_v8  ;;  %v249_v10 = vpop.permute.xlu1 %248 }
 0x35c   :  { %v256_v12 = vmul.f32 %v249_v10, %v483_v26 }
 0x35d   :  { %v261_v11 = vrot.slane %v260_v9, 4 }
 0x35e   :  { %v267_v16 = vsel %vm66_vm1, %v256_v12, 0.0 }
 0x35f   :  { %v262_v13 = vadd.f32 %v261_v11, %v260_v9  ;;  %v253_v14 = vpop.permute.xlu1 %252 }
 0x360   :  { %v257_v15 = vmul.f32 %v253_v14, %v486_v30 }
 0x361   :  { %v263_v18 = vrot.slane %v262_v13, 2 }
 0x362   :  { %v268_v17 = vsel %vm66_vm1, %v257_v15, 0.0 }
 0x363   :  { %v269_v19 = vadd.f32 %v268_v17, %v267_v16  ;;  %v264_v21 = vadd.f32 %v263_v18, %v262_v13 }
 0x365   :  { %v270_v20 = vrot.slane %v269_v19, 4  ;;  %v265_v24 = vrot.slane %v264_v21, 1 }
 0x367   :  { %v271_v22 = vadd.f32 %v270_v20, %v269_v19  ;;  %v266_v26 = vadd.f32 %v265_v24, %v264_v21 }
 0x369   :  { %v272_v23 = vrot.slane %v271_v22, 2 }
 0x36b   :  { %v273_v25 = vadd.f32 %v272_v23, %v271_v22 }
 0x36d   :  { %v274_v27 = vrot.slane %v273_v25, 1 }
 0x36f   :  { %v275_v28 = vadd.f32 %v274_v27, %v273_v25 }
 0x371   :  { %v278_v29 = vsel %vm216_vm3, %v275_v28, %v266_v26 }
 0x372   :  { %281 = vst.msk [vmem:[#allocation7] sm:$0x3] %vm280_vm6, %v278_v29 }
 0x373   :  { %390 = shalt.err (!%p387_p6)
}
 0x374   :  { %s391_s25 = scalar_lea.hbm %s526_s5, 32 }
 0x375   :  { %p392_p7 = scmp.ne.s32.totalorder %s526_s5, %s391_s25  ;;  %p395_p8 = scmp.lt.u32.totalorder %s391_s25, %s526_s5 }
 0x377   :  { %p397_p9 = pnand %p395_p8, %p392_p7 }
 0x379   :  { %400 = shalt.err (!%p397_p9)
}
 0x37a   :  { %291 = dma.vmem_to_hbm [thread:$0]  %s289_s21, 32, %s526_s5, [#allocation4]  }
 0x37b   :  { %405 = dma.done.wait [#allocation4], 32  }
 0x37c   :  { %406 = vsyncadd [#allocation4], 4294967264 }
 0x37d   :  { %295 = vsyncpa [#allocation3], 1 }
 0x37e   :  { %296 = vsyncpa [#allocation6], 1 }
 0x37f   :  { %297 = vsyncpa [#allocation4], 1 }

</bundles_post_ra>
